<compile_context>
chip_gen: v5e
topology: v5e:2x2
jax: 0.10.0
libtpu: 0.0.40
codegen_flags: <defaults>
</compile_context>

<pallas_src>
import jax
import jax.numpy as jnp
from jax.experimental import pallas as pl
from jax.experimental.pallas import tpu as pltpu

_LANE = 128
# ~2 MiB per block. Double-buffered input + output => ~8 MiB live VMEM,
# inside the default scoped-VMEM limit on all generations (v5e 16 MiB,
# v6e/v7x 32 MiB) with headroom on v7x's 64 MiB physical VMEM.
_TARGET_BLOCK_BYTES = 2 * 1024 * 1024


def _identity_kernel(x_ref, o_ref):
    # Pure pass-through of the current tile.
    o_ref[...] = x_ref[...]


def _pick_lane_dense_cols(total):
    """Largest multiple of 128 (capped at 4096) that divides `total`, else None."""
    for c in (4096, 2048, 1024, 512, 256, 128):
        if total % c == 0:
            return c
    return None


def identity_map(x):
    """Pallas TPU implementation of IdentityMap.forward: returns x unchanged.

    NOTE: the zero-cost answer for a true identity is simply `return x`; the
    Pallas path exists so the pass-through is expressed as a kernel.  The
    output aliases the input buffer so XLA can avoid the HBM round-trip.
    """
    # Degenerate inputs: nothing to move -> true identity, no kernel launch.
    if x.size == 0 or x.ndim == 0:
        return x

    orig_shape = x.shape
    total = int(x.size)
    dtype_bytes = jnp.dtype(x.dtype).itemsize
    # Sublane packing: 8 rows (f32/i32), 16 (bf16/f16), 32 (int8/fp8).
    pack = max(8, 32 // dtype_bytes)

    cols = _pick_lane_dense_cols(total)
    if cols is None:
        # Fallback for unaligned totals: keep the original last dim on lanes.
        # Full-extent lane block is always legal even if not 128-aligned.
        # TODO(synk): extremely wide unaligned inputs (cols*pack*itemsize >>
        # VMEM budget) would additionally need a column grid axis.
        cols = x.shape[-1] if x.ndim > 1 else total
    rows = total // cols

    x2 = x.reshape(rows, cols)

    # Byte-targeted row tile, rounded down to the sublane pack.
    tile_r = max(pack, _TARGET_BLOCK_BYTES // max(1, cols * dtype_bytes))
    tile_r = (tile_r // pack) * pack
    if tile_r >= rows:
        tile_r = rows  # full-extent block: always legal, single grid step

    grid = (pl.cdiv(rows, tile_r),)

    out = pl.pallas_call(
        _identity_kernel,
        out_shape=jax.ShapeDtypeStruct((rows, cols), x.dtype),
        grid=grid,
        in_specs=[pl.BlockSpec((tile_r, cols), lambda i: (i, 0))],
        out_specs=pl.BlockSpec((tile_r, cols), lambda i: (i, 0)),
        input_output_aliases={0: 0},
        compiler_params=pltpu.CompilerParams(
            dimension_semantics=("parallel",),
        ),
    )(x2)

    return out.reshape(orig_shape)


class IdentityMapJAX:
    """Mirror of the PyTorch IdentityMap module."""

    def __call__(self, x, *args, **kwargs):
        return identity_map(x)

    @property
    def config(self):
        return {"mm_resampler_type": None}


if __name__ == "__main__":
    key = jax.random.PRNGKey(0)
    module = IdentityMapJAX()

    # Small NCHW-like vision-feature pass-through (total % 128 == 0 -> lane-dense path).
    x = jax.random.normal(key, (2, 4, 16, 16), dtype=jnp.float32)
    y = jax.block_until_ready(module(x))
    assert y.shape == x.shape, (y.shape, x.shape)
    assert y.dtype == x.dtype, (y.dtype, x.dtype)
    assert bool(jnp.all(y == x)), "identity output mismatch (f32)"

    # bf16 sequence-like input exercises the sublane-pack / dtype path.
    xb = jax.random.normal(jax.random.PRNGKey(1), (2, 8, 32), dtype=jnp.bfloat16)
    yb = jax.block_until_ready(module(xb))
    assert yb.shape == xb.shape and yb.dtype == xb.dtype
    assert bool(jnp.all(yb == xb)), "identity output mismatch (bf16)"

    # Unaligned total exercises the fallback (last-dim-on-lanes) path.
    xu = jax.random.normal(jax.random.PRNGKey(2), (3, 5, 7), dtype=jnp.float32)
    yu = jax.block_until_ready(module(xu))
    assert yu.shape == xu.shape and yu.dtype == xu.dtype
    assert bool(jnp.all(yu == xu)), "identity output mismatch (unaligned)"

    assert module.config == {"mm_resampler_type": None}

    print("KERNEL_OK")
</pallas_src>

<mosaic_0001>
module attributes {stable_mosaic.version = 11 : i64} {
  func.func @_identity_kernel(%arg0: i32, %arg1: memref<1x2048xf32, #tpu.memory_space<vmem>>, %arg2: memref<1x2048xf32, #tpu.memory_space<vmem>>) attributes {dimension_semantics = [#tpu.dimension_semantics<parallel>], iteration_bounds = array<i64: 1>, scalar_prefetch = 0 : i64, scratch_operands = 0 : i64, tpu.core_type = #tpu.core_type<tc>, window_params = [{transform_indices = @transform_0, window_bounds = array<i64: 1, 2048>}, {transform_indices = @transform_1, window_bounds = array<i64: 1, 2048>}]} {
    %c0 = arith.constant 0 : index
    %c0_0 = arith.constant 0 : index
    %0 = vector.load %arg1[%c0, %c0_0] : memref<1x2048xf32, #tpu.memory_space<vmem>>, vector<1x2048xf32>
    %c0_1 = arith.constant 0 : index
    %c0_2 = arith.constant 0 : index
    %1 = vector.load %arg2[%c0_1, %c0_2] : memref<1x2048xf32, #tpu.memory_space<vmem>>, vector<1x2048xf32>
    tpu.vector_store %arg2[%c0_1, %c0_2], %0 {strides = array<i32>} : memref<1x2048xf32, #tpu.memory_space<vmem>>, vector<1x2048xf32>,
    return
  }
  func.func @transform_0(%arg0: i32) -> (i32, i32) {
    %c0_i32 = arith.constant 0 : i32
    %c0_i32_0 = arith.constant 0 : i32
    return %arg0, %c0_i32 : i32, i32
  }
  func.func @transform_1(%arg0: i32) -> (i32, i32) {
    %c0_i32 = arith.constant 0 : i32
    %c0_i32_0 = arith.constant 0 : i32
    return %arg0, %c0_i32 : i32, i32
  }
}

</mosaic_0001>

<bundles_post_ra>
// kernel: tpu_custom_call.1
= control target key start
LH: loop header
LB: loop body
LE: loop exit
PB: predicated region body
PF: predicated region fallthrough
CT: control target
= control target key end

     0   :  { %6 = vsyncpa [#allocation3], 0  ;;  %s116_s0 = inlined_call_operand.hbm [shape: f32[1,2048], index: 0, kind: input, shape index: {}, may-alias: {0,1}]   ;;  %s117_s1 = inlined_call_operand.hbm [shape: f32[1,2048], index: 1, kind: output, shape index: {}, may-alias: {0,1}]  }
   0x1   :  { %7 = vsyncpa [#allocation4], 0  ;;  %s13_s8 = sshll.u32 %s116_s0, 4  ;;  %s98_s9 = smov [#allocation2]   ;;  %s14_s8 = int_to_ptr.hbm [resolvable:$true] %s13_s8 }
   0x2   :  { %s15_s10 = sshll.u32 %s98_s9, 4  ;;  %s16_s10 = int_to_ptr.vmem [resolvable:$true] %s15_s10 }
   0x3   :  { %18 = dma.hbm_to_vmem [thread:$0]  %s14_s8, 256, %s16_s10, [#allocation3]  }
   0x4   :  { %94 = dma.done.wait [#allocation3], 256  }
   0x5   :  { %95 = vsyncadd [#allocation3], 4294967040  ;;  %s99_s11 = smov [#allocation5]   ;;  %s34_s15 = sshll.u32 %s117_s1, 4  ;;  %v23_v0 = vld [vmem:[#allocation2] sm:$0xff]  ;;  %v24_v1 = vld [vmem:[#allocation2 + $0x8] sm:$0xff]  ;;  %s35_s15 = int_to_ptr.hbm [resolvable:$true] %s34_s15 }
   0x6   :  { %s32_s12 = sshll.u32 %s99_s11, 4  ;;  %25 = vst [vmem:[#allocation5] sm:$0xff] %v23_v0  ;;  %s33_s12 = int_to_ptr.vmem [resolvable:$true] %s32_s12 }
   0x7   :  { %26 = vst [vmem:[#allocation5 + $0x8] sm:$0xff] %v24_v1 }
   0x8   :  { %37 = dma.vmem_to_hbm [thread:$0]  %s33_s12, 256, %s35_s15, [#allocation4]  }
   0x9   :  { %96 = dma.done.wait [#allocation4], 256  }
   0xa   :  { %97 = vsyncadd [#allocation4], 4294967040 }
   0xb   :  { %42 = vsyncpa [#allocation3], 1 }
   0xc   :  { %43 = vsyncpa [#allocation4], 1 }

</bundles_post_ra>
